<compile_context>
chip_gen: v7x
topology: tpu7x:2x2x1
jax: 0.10.0
libtpu: 0.0.40
codegen_flags: <defaults>
</compile_context>

<pallas_src>
import functools

import jax
import jax.numpy as jnp
from jax.experimental import pallas as pl
from jax.experimental.pallas import tpu as pltpu


def _round_up(n, m):
    return (n + m - 1) // m * m


def linear_af_square_kernel(x_ref, w_ref, b_ref, o_ref):
    # (tm, K) @ (K, Fp) -> (tm, Fp): bf16 MXU inputs, f32 accumulation.
    h = jnp.dot(x_ref[...], w_ref[...], preferred_element_type=jnp.float32)
    h = h + b_ref[...]                                    # f32 bias add (broadcast)
    # ELU (alpha=1): x for x > 0, exp(x) - 1 otherwise (exp runs on the EUP).
    elu = jnp.where(h > 0.0, h, jnp.exp(jnp.minimum(h, 0.0)) - 1.0)
    # Square and reduce the (zero-padded) feature axis -> (tm, 1).
    o_ref[...] = jnp.sum(elu * elu, axis=-1, keepdims=True)


@functools.partial(jax.jit, static_argnames=("tile_m",))
def linear_af_square(x, w, b, *, tile_m=128):
    """ELU(x @ w + b)**2 summed over the feature axis.

    x: (..., K) f32; w: (K, F) = pre-transposed nn.Linear weight; b: (F,).
    Returns (...,) f32, matching LinearAFSquare.forward.
    """
    lead = x.shape[:-1]
    K = x.shape[-1]
    F = w.shape[1]
    x2 = x.reshape(-1, K)
    B = x2.shape[0]

    # Lane-dense feature dim: zero-pad to a multiple of 128 (ELU(0)=0 -> no effect).
    Fp = _round_up(F, 128)
    if Fp != F:
        w = jnp.pad(w, ((0, 0), (0, Fp - F)))
        b = jnp.pad(b, (0, Fp - F))
    b2 = b.reshape(1, Fp).astype(jnp.float32)

    # bf16 MXU inputs (halves weight DMA bytes); accumulation stays f32.
    xb = x2.astype(jnp.bfloat16)
    wb = w.astype(jnp.bfloat16)

    # Batch tiling: tm is a multiple of 8 (sublanes), capped at tile_m.
    tm = min(tile_m, _round_up(B, 8))
    Bp = _round_up(B, tm)
    if Bp != B:
        xb = jnp.pad(xb, ((0, Bp - B), (0, 0)))
    grid = (Bp // tm,)

    cost = pl.CostEstimate(
        flops=2 * Bp * K * Fp + 5 * Bp * Fp,
        transcendentals=Bp * Fp,
        bytes_accessed=xb.size * 2 + wb.size * 2 + b2.size * 4 + Bp * 4,
    )

    out = pl.pallas_call(
        linear_af_square_kernel,
        out_shape=jax.ShapeDtypeStruct((Bp, 1), jnp.float32),
        grid_spec=pltpu.PrefetchScalarGridSpec(
            num_scalar_prefetch=0,
            grid=grid,
            in_specs=[
                pl.BlockSpec((tm, K), lambda i: (i, 0)),   # x tile per grid step
                pl.BlockSpec((K, Fp), lambda i: (0, 0)),   # weights resident in VMEM
                pl.BlockSpec((1, Fp), lambda i: (0, 0)),   # bias resident in VMEM
            ],
            out_specs=pl.BlockSpec((tm, 1), lambda i: (i, 0)),
        ),
        compiler_params=pltpu.CompilerParams(
            dimension_semantics=("parallel",)),
        cost_estimate=cost,
    )(xb, wb, b2)

    return out[:B, 0].reshape(lead)


if __name__ == "__main__":
    key = jax.random.PRNGKey(0)
    batch, in_features, features = 10, 32, 200

    k_x, k_w, k_b = jax.random.split(key, 3)
    x = jax.random.normal(k_x, (batch, in_features), dtype=jnp.float32)
    # nn.Linear(in_features, features) params, stored pre-transposed as (in, out).
    w = jax.random.normal(k_w, (in_features, features), dtype=jnp.float32) * 0.05
    b = jax.random.normal(k_b, (features,), dtype=jnp.float32) * 0.05

    out = linear_af_square(x, w, b)
    out = jax.block_until_ready(out)
    assert out.shape == (batch,)

    # Reference matched to the kernel's bf16-matmul / f32-epilogue path.
    h = jnp.dot(x.astype(jnp.bfloat16), w.astype(jnp.bfloat16),
                preferred_element_type=jnp.float32) + b
    elu = jnp.where(h > 0.0, h, jnp.exp(jnp.minimum(h, 0.0)) - 1.0)
    ref = jnp.sum(elu * elu, axis=-1)
    assert jnp.allclose(out, ref, atol=5e-4, rtol=5e-4), "mismatch vs bf16 reference"

    # Loose sanity check vs full-f32 PyTorch semantics (bf16 rounding only).
    hf = x @ w + b
    eluf = jnp.where(hf > 0.0, hf, jnp.exp(jnp.minimum(hf, 0.0)) - 1.0)
    reff = jnp.sum(eluf * eluf, axis=-1)
    assert jnp.allclose(out, reff, atol=5e-2, rtol=5e-2), "mismatch vs f32 reference"

    print("KERNEL_OK")
</pallas_src>

<mosaic_0001>
module attributes {stable_mosaic.version = 11 : i64} {
  func.func @linear_af_square_kernel(%arg0: i32, %arg1: memref<16x32xbf16, #tpu.memory_space<vmem>>, %arg2: memref<32x256xbf16, #tpu.memory_space<vmem>>, %arg3: memref<1x256xf32, #tpu.memory_space<vmem>>, %arg4: memref<16x1xf32, #tpu.memory_space<vmem>>) attributes {dimension_semantics = [#tpu.dimension_semantics<parallel>], iteration_bounds = array<i64: 1>, scalar_prefetch = 0 : i64, scratch_operands = 0 : i64, tpu.core_type = #tpu.core_type<tc>, window_params = [{transform_indices = @transform_0, window_bounds = array<i64: 16, 32>}, {pipeline_mode = #tpu.pipeline_mode<synchronous>, transform_indices = @transform_1, window_bounds = array<i64: 32, 256>}, {pipeline_mode = #tpu.pipeline_mode<synchronous>, transform_indices = @transform_2, window_bounds = array<i64: 1, 256>}, {transform_indices = @transform_3, window_bounds = array<i64: 16, 1>}]} {
    %c0 = arith.constant 0 : index
    %c0_0 = arith.constant 0 : index
    %0 = vector.load %arg1[%c0, %c0_0] : memref<16x32xbf16, #tpu.memory_space<vmem>>, vector<16x32xbf16>
    %c0_1 = arith.constant 0 : index
    %c0_2 = arith.constant 0 : index
    %1 = vector.load %arg2[%c0_1, %c0_2] : memref<32x256xbf16, #tpu.memory_space<vmem>>, vector<32x256xbf16>
    %cst = arith.constant dense<0.000000e+00> : vector<16x256xf32>
    %2 = tpu.matmul %0, %1, %cst {dimension_numbers = #tpu.dot_dimension_numbers<[1], [0], [0], [1], [0, 0, 1, 1], [], []>} : vector<16x32xbf16>, vector<32x256xbf16>, vector<16x256xf32> -> vector<16x256xf32>
    %c0_3 = arith.constant 0 : index
    %c0_4 = arith.constant 0 : index
    %3 = vector.load %arg3[%c0_3, %c0_4] : memref<1x256xf32, #tpu.memory_space<vmem>>, vector<1x256xf32>
    %4 = vector.broadcast %3 : vector<1x256xf32> to vector<16x256xf32>
    %5 = arith.addf %2, %4 : vector<16x256xf32>
    %cst_5 = arith.constant 0.000000e+00 : f32
    %6 = vector.broadcast %cst_5 : f32 to vector<16x256xf32>
    %7 = arith.cmpf ogt, %5, %6 : vector<16x256xf32>
    %cst_6 = arith.constant 0.000000e+00 : f32
    %8 = vector.broadcast %cst_6 : f32 to vector<16x256xf32>
    %9 = arith.minimumf %5, %8 : vector<16x256xf32>
    %10 = math.exp %9 : vector<16x256xf32>
    %cst_7 = arith.constant 1.000000e+00 : f32
    %11 = vector.broadcast %cst_7 : f32 to vector<16x256xf32>
    %12 = arith.subf %10, %11 : vector<16x256xf32>
    %13 = arith.select %7, %5, %12 : vector<16x256xi1>, vector<16x256xf32>
    %14 = arith.mulf %13, %13 : vector<16x256xf32>
    %cst_8 = arith.constant dense<0.000000e+00> : vector<16xf32>
    %15 = vector.multi_reduction <add>, %14, %cst_8 [1] : vector<16x256xf32> to vector<16xf32>
    %16 = vector.shape_cast %15 : vector<16xf32> to vector<16x1xf32>
    %c0_9 = arith.constant 0 : index
    %c0_10 = arith.constant 0 : index
    %17 = vector.load %arg4[%c0_9, %c0_10] : memref<16x1xf32, #tpu.memory_space<vmem>>, vector<16x1xf32>
    tpu.vector_store %arg4[%c0_9, %c0_10], %16 {strides = array<i32>} : memref<16x1xf32, #tpu.memory_space<vmem>>, vector<16x1xf32>,
    return
  }
  func.func @transform_0(%arg0: i32) -> (i32, i32) {
    %c0_i32 = arith.constant 0 : i32
    %c0_i32_0 = arith.constant 0 : i32
    return %arg0, %c0_i32 : i32, i32
  }
  func.func @transform_1(%arg0: i32) -> (i32, i32) {
    %c0_i32 = arith.constant 0 : i32
    %c0_i32_0 = arith.constant 0 : i32
    %c0_i32_1 = arith.constant 0 : i32
    return %c0_i32, %c0_i32_0 : i32, i32
  }
  func.func @transform_2(%arg0: i32) -> (i32, i32) {
    %c0_i32 = arith.constant 0 : i32
    %c0_i32_0 = arith.constant 0 : i32
    %c0_i32_1 = arith.constant 0 : i32
    return %c0_i32, %c0_i32_0 : i32, i32
  }
  func.func @transform_3(%arg0: i32) -> (i32, i32) {
    %c0_i32 = arith.constant 0 : i32
    %c0_i32_0 = arith.constant 0 : i32
    return %arg0, %c0_i32 : i32, i32
  }
}

</mosaic_0001>

<bundles_post_ra>
// kernel: linear_af_square.1
= control target key start
LH: loop header
LB: loop body
LE: loop exit
PB: predicated region body
PF: predicated region fallthrough
CT: control target
= control target key end

     0   :  { %v172_v1 = vmov 0   ;;  %vm58_vm0 = vcmask 261120   ;;  %v23_v6 = vlaneseq  ;;  %vm139_vm5 = vcmask 7168   ;;  %s217_s1 = inlined_call_operand.vmem [shape: bf16[32,256], index: 1, kind: input, shape index: {}]   ;;  %s218_s0 = inlined_call_operand.vmem [shape: bf16[16,32], index: 0, kind: input, shape index: {}]   ;;  %s219_s2 = inlined_call_operand.vmem [shape: f32[1,256], index: 2, kind: input, shape index: {}]   ;;  %s220_s3 = inlined_call_operand.vmem [shape: f32[16,1], index: 3, kind: output, shape index: {}]  }
   0x1   :  { %v157_v0 = vld [vmem:[%s217_s1 + $0x4] ss:$8 sps:$4 sm:$0xff]   ;;  %94 = vmatprep.mubr.bf16.mxu0 %v172_v1  ;;  %v159_v2 = vld [vmem:[%s217_s1] ss:$8 sps:$4 sm:$0xff]   ;;  %v160_v3 = vld [vmem:[%s217_s1 + $0x14] ss:$8 sps:$4 sm:$0xff]  }
   0x2   :  { %62 = vmatprep.subr.bf16.mxu0 %v157_v0  ;;  %v162_v4 = vld [vmem:[%s217_s1 + $0x10] ss:$8 sps:$4 sm:$0xff]   ;;  %v163_v5 = vld [vmem:[%s218_s0] sm:$0xff]   ;;  %v24_v7 = vshrl.u32 %v23_v6, 7 }
   0x3   :  { %63 = vmatpush1.bf16.msra.mxu0 %v159_v2  ;;  %v21_v9 = vld [vmem:[%s219_s2] sm:$0x3] }
   0x4   :  { %64 = vmatprep.subr.bf16.mxu0 %v160_v3  ;;  %v25_v8 = vsub.s32 0, %v24_v7  ;;  %v29_v10 = vsub.s32 1, %v24_v7 }
   0x6   :  { %v26_v11 = vrot.slane %v21_v9, %v25_v8  ;;  %v30_v12 = vrot.slane %v21_v9, %v29_v10 }
   0x7   :  { %65 = vmatpush1.bf16.msra.mxu0 %v162_v4 }
   0xa   :  { %151 = vmatmul.mubr.msk.bf16.vlgmr.msra.gmra.mrb[0].mxu0 %vm58_vm0, %v163_v5 }
  0xdd   :  { %v96_v13 = vpop.f32.mrb[0].mxu0 }
  0xde   :  { %v97_v14 = vadd.f32 %v96_v13, %v26_v11  ;;  %v98_v15 = vpop.f32.mrb[1].mxu0 }
  0xdf   :  { %v99_v16 = vadd.f32 %v98_v15, %v30_v12  ;;  %v100_v17 = vpop.f32.mrb[2].mxu0 }
  0xe0   :  { %v109_v18 = vmin.f32 %v97_v14, 0.0  ;;  %v101_v19 = vadd.f32 %v100_v17, %v26_v11  ;;  %v102_v20 = vpop.f32.mrb[3].mxu0  ;;  %vm105_vm1 = vcmp.gt.f32.partialorder %v97_v14, 0.0 }
  0xe1   :  { %v110_v21 = vmin.f32 %v99_v16, 0.0  ;;  %v103_v22 = vadd.f32 %v102_v20, %v30_v12  ;;  %vm106_vm2 = vcmp.gt.f32.partialorder %v99_v16, 0.0 }
  0xe2   :  { %v113_v23 = vmul.f32 1.442695, %v109_v18  ;;  %v111_v24 = vmin.f32 %v101_v19, 0.0  ;;  %vm107_vm3 = vcmp.gt.f32.partialorder %v101_v19, 0.0 }
  0xe3   :  { %v115_v25 = vmul.f32 1.442695, %v110_v21  ;;  %v112_v26 = vmin.f32 %v103_v22, 0.0  ;;  %vm108_vm4 = vcmp.gt.f32.partialorder %v103_v22, 0.0 }
  0xe4   :  { %164 = vpow2.f32 %v113_v23  ;;  %v117_v27 = vmul.f32 1.442695, %v111_v24 }
  0xe5   :  { %166 = vpow2.f32 %v115_v25  ;;  %v119_v28 = vmul.f32 1.442695, %v112_v26 }
  0xe6   :  { %168 = vpow2.f32 %v117_v27 }
  0xe7   :  { %170 = vpow2.f32 %v119_v28 }
  0xee   :  { %v165_v29 = vpop.eup %164 }
  0xef   :  { %v167_v30 = vpop.eup %166  ;;  %v152_v31 = vadd.f32 -1.0, %v165_v29 }
  0xf0   :  { %v169_v32 = vpop.eup %168  ;;  %v153_v33 = vadd.f32 -1.0, %v167_v30 }
  0xf1   :  { %v171_v34 = vpop.eup %170  ;;  %v125_v35 = vsel %vm105_vm1, %v97_v14, %v152_v31  ;;  %v154_v36 = vadd.f32 -1.0, %v169_v32 }
  0xf2   :  { %v126_v37 = vsel %vm106_vm2, %v99_v16, %v153_v33  ;;  %v129_v38 = vmul.f32 %v125_v35, %v125_v35  ;;  %v155_v39 = vadd.f32 -1.0, %v171_v34 }
  0xf3   :  { %v130_v40 = vmul.f32 %v126_v37, %v126_v37  ;;  %v127_v41 = vsel %vm107_vm3, %v101_v19, %v154_v36 }
  0xf4   :  { %v128_v42 = vsel %vm108_vm4, %v103_v22, %v155_v39  ;;  %v131_v43 = vmul.f32 %v127_v41, %v127_v41 }
  0xf5   :  { %v133_v44 = vadd.f32 %v130_v40, %v129_v38  ;;  %v132_v45 = vmul.f32 %v128_v42, %v128_v42 }
  0xf7   :  { %134 = vadd.xlane.f32.xlu0 %v133_v44  ;;  %v136_v46 = vadd.f32 %v132_v45, %v131_v43 }
  0xfb   :  { %137 = vadd.xlane.f32.xlu0 %v136_v46 }
 0x184   :  { %v135_v47 = vpop.xlane.xlu0 %134 }
 0x185   :  { %140 = vst.msk [vmem:[%s220_s3] sm:$0xff] %vm139_vm5, %v135_v47 }
 0x188   :  { %v138_v48 = vpop.xlane.xlu0 %137 }
 0x189   :  { %141 = vst.msk [vmem:[%s220_s3 + $0x8] sm:$0xff] %vm139_vm5, %v138_v48 }

</bundles_post_ra>
